<compile_context>
chip_gen: v7x
topology: tpu7x:2x2x1
jax: 0.10.0
libtpu: 0.0.40
codegen_flags: <defaults>
</compile_context>

<pallas_src>
import math

import jax
import jax.numpy as jnp
from jax.experimental import pallas as pl
from jax.experimental.pallas import tpu as pltpu


def _time_gcn_kernel(x_ref, wb_ref, o_ref):
    # x_ref : (tile_rows, lane)  activation tile
    # wb_ref: (2, lane)          row 0 = diag(w_hidden), row 1 = bias (f32, grid-resident)
    # o_ref : (tile_rows, lane)  output tile
    y = x_ref[...] * wb_ref[0:1, :] + wb_ref[1:2, :]
    o_ref[...] = jnp.maximum(y, 0.0).astype(o_ref.dtype)


def _round_up(a, m):
    return -(-a // m) * m


def time_gcn_forward(x, w_hidden, b_hidden, *, target_block_bytes=4 * 1024 * 1024):
    """x: (B, N, D); w_hidden: (D, D); b_hidden: (D,) -> (B, N, D)."""
    B, N, D = x.shape
    dtype = x.dtype
    itemsize = jnp.dtype(dtype).itemsize
    sublane = max(8, 32 // itemsize)            # 8 f32, 16 bf16, 32 int8/fp8

    # einsum('bnd,dd->bnd') == elementwise scale by diag(w_hidden).
    # Params kept in f32 so bf16/fp8 activations compute in f32 (matches torch
    # promotion); output is cast back to x.dtype inside the kernel.
    w_diag = jnp.diagonal(w_hidden).astype(jnp.float32)
    bias = b_hidden.astype(jnp.float32)

    # ---- Lane-dense flat view: (total,) -> (rows, lane), lane % 128 == 0. ---
    if D % 128 == 0:
        lane = D
    else:
        lane = D * 128 // math.gcd(D, 128)      # lcm(D, 128): unmasked full-lane stores
    rep = lane // D                             # feature rows packed per lane row

    total = B * N * D
    x_flat = x.reshape(-1)                      # free (row-major bitcast)
    pad_elems = _round_up(total, lane) - total
    if pad_elems:
        # Only hit for awkward D with a non-divisible B*N; unavoidable copy.
        x_flat = jnp.pad(x_flat, (0, pad_elems))
    rows = x_flat.shape[0] // lane
    x2 = x_flat.reshape(rows, lane)             # free when pad_elems == 0

    # Grid-resident (2, lane) scale/bias block.  Every lane row starts at a
    # flat offset that is a multiple of lane (hence of D), so one tiled pattern
    # is valid for all rows.
    wb = jnp.stack([jnp.tile(w_diag, rep), jnp.tile(bias, rep)])

    # ---- Row tile: ~target_block_bytes per buffer, sublane-aligned, and at
    # ---- least 2 grid steps when possible (v7x megacore). -------------------
    target_rows = max(
        sublane, (target_block_bytes // (lane * itemsize)) // sublane * sublane
    )
    tile_rows = min(target_rows, _round_up(rows, sublane))
    if rows > 2 * sublane:  # enough work to feed both TensorCores
        tile_rows = min(tile_rows, _round_up(pl.cdiv(rows, 2), sublane))
    grid = (pl.cdiv(rows, tile_rows),)          # ragged last block handled by Pallas

    out2 = pl.pallas_call(
        _time_gcn_kernel,
        out_shape=jax.ShapeDtypeStruct((rows, lane), dtype),
        grid_spec=pltpu.PrefetchScalarGridSpec(
            num_scalar_prefetch=0,
            grid=grid,
            in_specs=[
                pl.BlockSpec((tile_rows, lane), lambda i: (i, 0)),
                pl.BlockSpec((2, lane), lambda i: (0, 0)),   # VMEM-resident constants
            ],
            out_specs=pl.BlockSpec((tile_rows, lane), lambda i: (i, 0)),
        ),
        compiler_params=pltpu.CompilerParams(
            dimension_semantics=("parallel",),
            vmem_limit_bytes=32 * 1024 * 1024,
        ),
    )(x2, wb)

    out_flat = out2.reshape(-1)                 # free
    if pad_elems:
        out_flat = out_flat[:total]             # only when padding was unavoidable
    return out_flat.reshape(B, N, D)            # free


if __name__ == "__main__":
    # Small shapes consistent with the module's forward: (B, N, D)
    B, N, D = 2, 16, 32
    key = jax.random.PRNGKey(0)
    kx, kw = jax.random.split(key)

    x = jax.random.normal(kx, (B, N, D), dtype=jnp.float32)

    # Deterministic parameter init matching nn.init.xavier_uniform_ / zeros_
    bound = (6.0 / (D + D)) ** 0.5
    w_hidden = jax.random.uniform(
        kw, (D, D), dtype=jnp.float32, minval=-bound, maxval=bound
    )
    b_hidden = jnp.zeros((D,), dtype=jnp.float32)

    out = time_gcn_forward(x, w_hidden, b_hidden)
    out = jax.block_until_ready(out)

    # Reference check in plain JAX (same semantics as the torch einsum).
    ref = jnp.maximum(jnp.einsum("bnd,dd->bnd", x, w_hidden) + b_hidden, 0.0)
    assert out.shape == ref.shape
    assert jnp.allclose(out, ref, atol=1e-6, rtol=1e-6)

    print("KERNEL_OK")
</pallas_src>

<mosaic_0001>
module attributes {stable_mosaic.version = 11 : i64} {
  func.func @_time_gcn_kernel(%arg0: i32, %arg1: memref<8x128xf32, #tpu.memory_space<vmem>>, %arg2: memref<2x128xf32, #tpu.memory_space<vmem>>, %arg3: memref<8x128xf32, #tpu.memory_space<vmem>>) attributes {dimension_semantics = [#tpu.dimension_semantics<parallel>], iteration_bounds = array<i64: 1>, scalar_prefetch = 0 : i64, scratch_operands = 0 : i64, tpu.core_type = #tpu.core_type<tc>, window_params = [{transform_indices = @transform_0, window_bounds = array<i64: 8, 128>}, {pipeline_mode = #tpu.pipeline_mode<synchronous>, transform_indices = @transform_1, window_bounds = array<i64: 2, 128>}, {transform_indices = @transform_2, window_bounds = array<i64: 8, 128>}]} {
    %c0 = arith.constant 0 : index
    %c0_0 = arith.constant 0 : index
    %0 = vector.load %arg1[%c0, %c0_0] : memref<8x128xf32, #tpu.memory_space<vmem>>, vector<8x128xf32>
    %c0_1 = arith.constant 0 : index
    %c0_2 = arith.constant 0 : index
    %1 = vector.load %arg2[%c0_1, %c0_2] : memref<2x128xf32, #tpu.memory_space<vmem>>, vector<1x128xf32>
    %2 = vector.broadcast %1 : vector<1x128xf32> to vector<8x128xf32>
    %3 = arith.mulf %0, %2 : vector<8x128xf32>
    %c1 = arith.constant 1 : index
    %c0_3 = arith.constant 0 : index
    %4 = vector.load %arg2[%c1, %c0_3] : memref<2x128xf32, #tpu.memory_space<vmem>>, vector<1x128xf32>
    %5 = vector.broadcast %4 : vector<1x128xf32> to vector<8x128xf32>
    %6 = arith.addf %3, %5 : vector<8x128xf32>
    %cst = arith.constant 0.000000e+00 : f32
    %7 = vector.broadcast %cst : f32 to vector<8x128xf32>
    %8 = arith.maximumf %6, %7 : vector<8x128xf32>
    %c0_4 = arith.constant 0 : index
    %c0_5 = arith.constant 0 : index
    %9 = vector.load %arg3[%c0_4, %c0_5] : memref<8x128xf32, #tpu.memory_space<vmem>>, vector<8x128xf32>
    tpu.vector_store %arg3[%c0_4, %c0_5], %8 {strides = array<i32>} : memref<8x128xf32, #tpu.memory_space<vmem>>, vector<8x128xf32>,
    return
  }
  func.func @transform_0(%arg0: i32) -> (i32, i32) {
    %c0_i32 = arith.constant 0 : i32
    %c0_i32_0 = arith.constant 0 : i32
    return %arg0, %c0_i32 : i32, i32
  }
  func.func @transform_1(%arg0: i32) -> (i32, i32) {
    %c0_i32 = arith.constant 0 : i32
    %c0_i32_0 = arith.constant 0 : i32
    %c0_i32_1 = arith.constant 0 : i32
    return %c0_i32, %c0_i32_0 : i32, i32
  }
  func.func @transform_2(%arg0: i32) -> (i32, i32) {
    %c0_i32 = arith.constant 0 : i32
    %c0_i32_0 = arith.constant 0 : i32
    return %arg0, %c0_i32 : i32, i32
  }
}

</mosaic_0001>

<bundles_post_ra>
// kernel: tpu_custom_call.1
= control target key start
LH: loop header
LB: loop body
LE: loop exit
PB: predicated region body
PF: predicated region fallthrough
CT: control target
= control target key end

     0   :  { %7 = vsyncpa [#allocation3], 0  ;;  %s153_s0 = inlined_call_operand.hbm [shape: f32[8,128], index: 0, kind: input, shape index: {}]   ;;  %s154_s1 = inlined_call_operand.vmem [shape: f32[2,128], index: 1, kind: input, shape index: {}]   ;;  %s155_s2 = inlined_call_operand.hbm [shape: f32[8,128], index: 2, kind: output, shape index: {}]  }
   0x1   :  { %8 = vsyncpa [#allocation4], 0  ;;  %s106_s9 = smov [#allocation2]   ;;  %s58_s13 = scalar_lea.hbm %s153_s0, 128 }
   0x2   :  { %s15_s10 = sshll.u32 %s106_s9, 4  ;;  %p59_p0 = scmp.ne.s32.totalorder %s153_s0, %s58_s13  ;;  %s16_s10 = int_to_ptr.vmem [resolvable:$true] %s15_s10 }
   0x3   :  { %p62_p1 = scmp.lt.u32.totalorder %s58_s13, %s153_s0 }
   0x5   :  { %p64_p2 = pnand %p62_p1, %p59_p0 }
   0x7   :  { %67 = shalt.err (!%p64_p2)
}
   0x8   :  { %s68_s18 = scalar_lea.vmem %s16_s10, 128  ;;  %p73_p4 = scmp.lt.s32.totalorder %s16_s10, %s16_s10 }
   0x9   :  { %p69_p3 = scmp.ne.s32.totalorder %s16_s10, %s68_s18  ;;  %p74_p5 = scmp.lt.s32.totalorder %s68_s18, %s68_s18 }
   0xb   :  { %p75_p6 = por %p74_p5, %p73_p4 }
   0xd   :  { %p76_p7 = pnand %p75_p6, %p69_p3 }
   0xf   :  { %79 = shalt.err (!%p76_p7)
}
  0x10   :  { %18 = dma.hbm_to_vmem [thread:$0]  %s153_s0, 128, %s16_s10, [#allocation3]  }
  0x11   :  { %102 = dma.done.wait [#allocation3], 128  }
  0x12   :  { %103 = vsyncadd [#allocation3], 4294967168  ;;  %v24_v0 = vld [vmem:[#allocation2] sm:$0xff]  ;;  %s107_s25 = smov [#allocation5]  }
  0x13   :  { %v54_v1 = vld [vmem:[%s154_s1] ss:$0 sm:$0xff]  ;;  %v55_v2 = vld [vmem:[%s154_s1 + $0x1] ss:$0 sm:$0xff]  ;;  %s45_s26 = sshll.u32 %s107_s25, 4  ;;  %s46_s26 = int_to_ptr.vmem [resolvable:$true] %s45_s26 }
  0x14   :  { %v30_v3 = vmul.f32 %v54_v1, %v24_v0  ;;  %s80_s27 = scalar_lea.vmem %s46_s26, 128  ;;  %p85_p9 = scmp.lt.s32.totalorder %s46_s26, %s46_s26 }
  0x15   :  { %p81_p8 = scmp.ne.s32.totalorder %s46_s26, %s80_s27  ;;  %p86_p10 = scmp.lt.s32.totalorder %s80_s27, %s80_s27 }
  0x16   :  { %v36_v4 = vadd.f32 %v55_v2, %v30_v3 }
  0x17   :  { %p87_p11 = por %p86_p10, %p85_p9 }
  0x18   :  { %v37_v5 = vmax.f32 %v36_v4, 0.0 }
  0x19   :  { %p88_p12 = pnand %p87_p11, %p81_p8 }
  0x1a   :  { %38 = vst [vmem:[#allocation5] sm:$0xff] %v37_v5 }
  0x1b   :  { %91 = shalt.err (!%p88_p12)
}
  0x1c   :  { %s92_s29 = scalar_lea.hbm %s155_s2, 128 }
  0x1d   :  { %p93_p13 = scmp.ne.s32.totalorder %s155_s2, %s92_s29  ;;  %p96_p0 = scmp.lt.u32.totalorder %s92_s29, %s155_s2 }
  0x1f   :  { %p98_p1 = pnand %p96_p0, %p93_p13 }
  0x21   :  { %101 = shalt.err (!%p98_p1)
}
  0x22   :  { %48 = dma.vmem_to_hbm [thread:$0]  %s46_s26, 128, %s155_s2, [#allocation4]  }
  0x23   :  { %104 = dma.done.wait [#allocation4], 128  }
  0x24   :  { %105 = vsyncadd [#allocation4], 4294967168 }
  0x25   :  { %52 = vsyncpa [#allocation3], 1 }
  0x26   :  { %53 = vsyncpa [#allocation4], 1 }

</bundles_post_ra>
